<compile_context>
chip_gen: v5e
topology: v5e:2x2
jax: 0.10.0
libtpu: 0.0.40
codegen_flags: <defaults>
</compile_context>

<pallas_src>
import math

import jax
import jax.numpy as jnp
from jax.experimental import pallas as pl
from jax.experimental.pallas import tpu as pltpu


def linear_clamp_kernel(xw_ref, o_ref):
    # xw_ref: (B+1, IN+1) VMEM
    #   rows 0..B-1 : [x_row, 1.0]
    #   row  B      : [W/6,  b/6 + 0.5]
    # o_ref : (B, 1) VMEM
    B = o_ref.shape[0]
    x_aug = xw_ref[:B, :]                 # (B, IN+1)
    wb = xw_ref[B:B + 1, :]               # (1, IN+1)
    prod = x_aug * wb                     # VPU elementwise, broadcast over batch
    s = jnp.sum(prod, axis=-1, keepdims=True)   # XLU cross-lane reduce -> (B, 1)
    # clamp(y, 0, 1) + 0.5 == clamp(y + 0.5, 0.5, 1.5); the +0.5 already lives
    # in the folded bias, so a single clamp finishes the op.
    o_ref[...] = jnp.clip(s, 0.5, 1.5).astype(o_ref.dtype)


def model_forward(x, w, b):
    """x: [B, IN] f32, w: [OUT=1, IN] f32, b: [1] f32.

    Returns [B, 1] f32 equal to (clamp(x @ W^T + b, 0, 6) + 3) / 6.
    """
    B, IN = x.shape
    OUT = w.shape[0]

    # One-time constant transform of the parameters (fold '+3' and '/6').
    w_folded = (w.astype(jnp.float32) * (1.0 / 6.0)).reshape(1, IN)          # W/6
    b_folded = (b.astype(jnp.float32) * (1.0 / 6.0) + 0.5).reshape(1, 1)     # b/6 + 0.5

    # Single stacked VMEM input: [x | 1] on top, [W/6 | b/6+0.5] underneath.
    x_aug = jnp.concatenate(
        [x.astype(jnp.float32), jnp.ones((B, 1), jnp.float32)], axis=1)      # (B, IN+1)
    wb_row = jnp.concatenate([w_folded, b_folded], axis=1)                   # (1, IN+1)
    xw = jnp.concatenate([x_aug, wb_row], axis=0)                            # (B+1, IN+1)

    return pl.pallas_call(
        linear_clamp_kernel,
        out_shape=jax.ShapeDtypeStruct((B, OUT), jnp.float32),
        in_specs=[pl.BlockSpec(memory_space=pltpu.MemorySpace.VMEM)],
        out_specs=pl.BlockSpec(memory_space=pltpu.MemorySpace.VMEM),
    )(xw)


if __name__ == "__main__":
    key = jax.random.PRNGKey(0)
    kx, kw, kb = jax.random.split(key, 3)

    B, IN, OUT = 1, 6, 1

    # Input (matches torch.randn(1, 6))
    x = jax.random.normal(kx, (B, IN), dtype=jnp.float32)

    # Deterministic nn.Linear(6, 1)-style init: U(-1/sqrt(IN), 1/sqrt(IN))
    bound = 1.0 / math.sqrt(IN)
    w = jax.random.uniform(kw, (OUT, IN), minval=-bound, maxval=bound,
                           dtype=jnp.float32)
    b = jax.random.uniform(kb, (OUT,), minval=-bound, maxval=bound,
                           dtype=jnp.float32)

    out = model_forward(x, w, b)
    jax.block_until_ready(out)

    # Reference check against the original (un-folded) formulation.
    ref = (jnp.clip(x @ w.T + b.reshape(1, OUT), 0.0, 6.0) + 3.0) / 6.0
    assert out.shape == (B, OUT), (out.shape, (B, OUT))
    assert jnp.allclose(out, ref, atol=1e-5, rtol=1e-5), (out, ref)

    print("KERNEL_OK")
</pallas_src>

<mosaic_0001>
module attributes {stable_mosaic.version = 11 : i64} {
  func.func @linear_clamp_kernel(%arg0: memref<2x7xf32, #tpu.memory_space<vmem>>, %arg1: memref<1x1xf32, #tpu.memory_space<vmem>>) attributes {dimension_semantics = [], scalar_prefetch = 0 : i64, scratch_operands = 0 : i64, tpu.core_type = #tpu.core_type<tc>} {
    %c0 = arith.constant 0 : index
    %c0_0 = arith.constant 0 : index
    %0 = vector.load %arg0[%c0, %c0_0] : memref<2x7xf32, #tpu.memory_space<vmem>>, vector<1x7xf32>
    %c1 = arith.constant 1 : index
    %c0_1 = arith.constant 0 : index
    %1 = vector.load %arg0[%c1, %c0_1] : memref<2x7xf32, #tpu.memory_space<vmem>>, vector<1x7xf32>
    %2 = arith.mulf %0, %1 : vector<1x7xf32>
    %cst = arith.constant dense<0.000000e+00> : vector<1xf32>
    %3 = vector.multi_reduction <add>, %2, %cst [1] : vector<1x7xf32> to vector<1xf32>
    %4 = vector.shape_cast %3 : vector<1xf32> to vector<1x1xf32>
    %cst_2 = arith.constant 5.000000e-01 : f32
    %cst_3 = arith.constant 1.500000e+00 : f32
    %5 = vector.broadcast %cst_2 : f32 to vector<1x1xf32>
    %6 = arith.maximumf %5, %4 : vector<1x1xf32>
    %7 = vector.broadcast %cst_3 : f32 to vector<1x1xf32>
    %8 = arith.minimumf %7, %6 : vector<1x1xf32>
    %c0_4 = arith.constant 0 : index
    %c0_5 = arith.constant 0 : index
    %9 = vector.load %arg1[%c0_4, %c0_5] : memref<1x1xf32, #tpu.memory_space<vmem>>, vector<1x1xf32>
    tpu.vector_store %arg1[%c0_4, %c0_5], %8 {strides = array<i32>} : memref<1x1xf32, #tpu.memory_space<vmem>>, vector<1x1xf32>,
    return
  }
}

</mosaic_0001>

<bundles_post_ra>
// kernel: tpu_custom_call.1
= control target key start
LH: loop header
LB: loop body
LE: loop exit
PB: predicated region body
PF: predicated region fallthrough
CT: control target
= control target key end

     0   :  { %6 = vsyncpa [#allocation3], 0  ;;  %s123_s0 = inlined_call_operand.hbm [shape: f32[2,7], index: 0, kind: input, shape index: {}]   ;;  %s124_s1 = inlined_call_operand.hbm [shape: f32[1,1], index: 1, kind: output, shape index: {}]  }
   0x1   :  { %7 = vsyncpa [#allocation4], 0  ;;  %s13_s8 = sshll.u32 %s123_s0, 4  ;;  %s105_s9 = smov [#allocation2]   ;;  %s14_s8 = int_to_ptr.hbm [resolvable:$true] %s13_s8 }
   0x2   :  { %s15_s10 = sshll.u32 %s105_s9, 4  ;;  %s16_s10 = int_to_ptr.vmem [resolvable:$true] %s15_s10 }
   0x3   :  { %18 = dma.hbm_to_vmem [thread:$0]  %s14_s8, 32, %s16_s10, [#allocation3]  }
   0x4   :  { %101 = dma.done.wait [#allocation3], 32  }
   0x5   :  { %102 = vsyncadd [#allocation3], 4294967264  ;;  %v23_v0 = vld [vmem:[#allocation2] sm:$0x1]  ;;  %v24_v1 = vld [vmem:[#allocation2 + $0x1] sm:$0x1] }
   0x6   :  { %vm26_vm0 = vcmask 49152   ;;  %v25_v2 = vmul.f32 %v24_v1, %v23_v0  ;;  %s106_s11 = smov [#allocation5]   ;;  %s41_s0 = sshll.u32 %s124_s1, 4  ;;  %vm32_vm1 = vcmask 0   ;;  %s42_s0 = int_to_ptr.hbm [resolvable:$true] %s41_s0 }
   0x7   :  { %s39_s12 = sshll.u32 %s106_s11, 4  ;;  %s40_s12 = int_to_ptr.vmem [resolvable:$true] %s39_s12 }
   0x8   :  { %v27_v3 = vsel %vm26_vm0, %v25_v2, 0.0 }
   0x9   :  { %28 = vadd.xlane.f32.xlu0 %v27_v3 }
  0x7c   :  { %v29_v4 = vpop.xlane.xlu0 %28 }
  0x7d   :  { %v30_v5 = vmax.f32 %v29_v4, 0.5 }
  0x7f   :  { %v31_v6 = vmin.f32 %v30_v5, 1.5 }
  0x81   :  { %33 = vst.msk [vmem:[#allocation5] sm:$0x1] %vm32_vm1, %v31_v6 }
  0x82   :  { %44 = dma.vmem_to_hbm [thread:$0]  %s40_s12, 16, %s42_s0, [#allocation4]  }
  0x83   :  { %103 = dma.done.wait [#allocation4], 16  }
  0x84   :  { %104 = vsyncadd [#allocation4], 4294967280 }
  0x85   :  { %49 = vsyncpa [#allocation3], 1 }
  0x86   :  { %50 = vsyncpa [#allocation4], 1 }

</bundles_post_ra>
